<compile_context>
chip_gen: v7x
topology: tpu7x:2x2x1
jax: 0.10.0
libtpu: 0.0.40
codegen_flags: <defaults>
</compile_context>

<pallas_src>
import functools

import numpy as np
import jax
import jax.numpy as jnp
from jax.experimental import pallas as pl
from jax.experimental.pallas import tpu as pltpu


# --------------------------- generation-aware sizing -------------------------

def _tpu_vmem_capacity_bytes():
    try:
        info = pltpu.get_tpu_info()
        cap = int(getattr(info, "vmem_capacity_bytes", 0))
        if cap > 0:
            return cap
    except Exception:
        pass
    return 64 * 1024 * 1024  # conservative (v7x-sized) fallback


_VMEM_CAP = _tpu_vmem_capacity_bytes()
if _VMEM_CAP >= 100 * 1024 * 1024:
    # v5e / v6e: 128 MiB physical VMEM per core.
    VMEM_LIMIT_BYTES = 96 * 1024 * 1024
    SPMM_TM_TARGET, SPMM_TK_TARGET = 512, 8192   # 8 MiB bf16 A block (16 MiB double-buffered)
else:
    # v7x: 64 MiB physical VMEM per core.
    VMEM_LIMIT_BYTES = 48 * 1024 * 1024
    SPMM_TM_TARGET, SPMM_TK_TARGET = 512, 4096   # 4 MiB bf16 A block (8 MiB double-buffered)


def _pick_tile(n, target, quantum):
    """Largest tile <= target that divides n and is a multiple of `quantum`.

    Falls back to `n` (a full-extent block is always a legal BlockSpec dim)."""
    if n <= target:
        return n
    t = (target // quantum) * quantum
    while t >= quantum:
        if n % t == 0:
            return t
        t -= quantum
    return n


def _cparams(dims):
    return pltpu.CompilerParams(dimension_semantics=dims,
                                vmem_limit_bytes=VMEM_LIMIT_BYTES)


# ----------------------------- Pallas kernels -------------------------------

def spmm_linear_kernel(tk, a_ref, x_ref, w_ref, b_ref, o_ref, acc_ref):
    """o = (A @ X) @ W + b.  A is (tm, tk) streamed; X is fully VMEM-resident."""
    k = pl.program_id(1)

    @pl.when(k == 0)
    def _():
        acc_ref[...] = jnp.zeros_like(acc_ref)

    if tk == x_ref.shape[0]:           # single contraction step: whole X
        xk = x_ref[...]
    else:
        off = pl.multiple_of(k * tk, tk)
        xk = x_ref[pl.ds(off, tk), :]
    acc_ref[...] += jnp.dot(a_ref[...], xk, preferred_element_type=jnp.float32)

    @pl.when(k == pl.num_programs(1) - 1)
    def _():
        out = jnp.dot(acc_ref[...], w_ref[...],
                      preferred_element_type=jnp.float32) + b_ref[...]
        o_ref[...] = out.astype(o_ref.dtype)


def spmm_bn_elu_linear_kernel(tk, a_ref, h_ref, scale_ref, shift_ref,
                              w_ref, b_ref, o_ref, acc_ref):
    """o = (A @ ELU(h*scale + shift)) @ W + b  (conv2 with fused BN/ELU prologue)."""
    k = pl.program_id(1)

    @pl.when(k == 0)
    def _():
        acc_ref[...] = jnp.zeros_like(acc_ref)

    if tk == h_ref.shape[0]:
        hk = h_ref[...]
    else:
        off = pl.multiple_of(k * tk, tk)
        hk = h_ref[pl.ds(off, tk), :]
    y = hk * scale_ref[...] + shift_ref[...]
    y = jnp.where(y > 0, y, jnp.expm1(y))          # ELU(alpha=1), expm1 for precision
    acc_ref[...] += jnp.dot(a_ref[...], y.astype(jnp.bfloat16),
                            preferred_element_type=jnp.float32)

    @pl.when(k == pl.num_programs(1) - 1)
    def _():
        out = jnp.dot(acc_ref[...], w_ref[...],
                      preferred_element_type=jnp.float32) + b_ref[...]
        o_ref[...] = out.astype(o_ref.dtype)


def bn_sum_kernel(h_ref, s_ref):
    """Accumulate per-channel sum over node tiles."""
    @pl.when(pl.program_id(0) == 0)
    def _():
        s_ref[...] = jnp.zeros_like(s_ref)

    s_ref[...] += jnp.sum(h_ref[...], axis=0, keepdims=True)


def bn_centered_ss_kernel(h_ref, mean_ref, css_ref):
    """Accumulate per-channel centered sum-of-squares (shifted two-pass variance)."""
    @pl.when(pl.program_id(0) == 0)
    def _():
        css_ref[...] = jnp.zeros_like(css_ref)

    d = h_ref[...] - mean_ref[...]
    css_ref[...] += jnp.sum(d * d, axis=0, keepdims=True)


def degree_mlp_kernel(z_ref, w1_ref, b1_ref, w2r_ref, b2_ref, o_ref):
    """Linear -> ReLU -> VPU row-reduce against w2 (degree decoder)."""
    h = jnp.dot(z_ref[...], w1_ref[...],
                preferred_element_type=jnp.float32) + b1_ref[...]
    h = jnp.maximum(h, 0.0)
    out = jnp.sum(h * w2r_ref[...], axis=-1, keepdims=True) + b2_ref[...]
    o_ref[...] = out.astype(o_ref.dtype)


def edge_mlp_kernel(zr_ref, zc_ref, w1r_ref, w1c_ref, b1_ref, w2r_ref, b2_ref, o_ref):
    """cat([z[row], z[col]]) @ W1 as split matmuls -> ReLU -> VPU reduce -> sigmoid."""
    h = (jnp.dot(zr_ref[...], w1r_ref[...], preferred_element_type=jnp.float32)
         + jnp.dot(zc_ref[...], w1c_ref[...], preferred_element_type=jnp.float32)
         + b1_ref[...])
    h = jnp.maximum(h, 0.0)
    out = jnp.sum(h * w2r_ref[...], axis=-1, keepdims=True) + b2_ref[...]
    o_ref[...] = jax.nn.sigmoid(out).astype(o_ref.dtype)


# ----------------------------- pallas_call wrappers --------------------------

def gcn_conv1(a_bf16, x_bf16, w, b):
    n = a_bf16.shape[0]
    c = x_bf16.shape[1]
    f = w.shape[1]
    tm = _pick_tile(n, SPMM_TM_TARGET, 16)   # bf16 A rows -> multiple of 16 sublanes
    tk = _pick_tile(n, SPMM_TK_TARGET, 128)
    grid = (n // tm, n // tk)
    cost = pl.CostEstimate(
        flops=2 * n * n * c + 2 * n * c * f,
        transcendentals=0,
        bytes_accessed=2 * n * n + 2 * n * c + 4 * (w.size + b.size + n * f))
    return pl.pallas_call(
        functools.partial(spmm_linear_kernel, tk),
        out_shape=jax.ShapeDtypeStruct((n, f), jnp.float32),
        grid_spec=pltpu.PrefetchScalarGridSpec(
            num_scalar_prefetch=0,
            grid=grid,
            in_specs=[
                pl.BlockSpec((tm, tk), lambda i, k: (i, k)),   # A: dominant HBM stream
                pl.BlockSpec((n, c), lambda i, k: (0, 0)),     # X: VMEM-resident, DMA once
                pl.BlockSpec((c, f), lambda i, k: (0, 0)),
                pl.BlockSpec((1, f), lambda i, k: (0, 0)),
            ],
            out_specs=pl.BlockSpec((tm, f), lambda i, k: (i, 0)),
            scratch_shapes=[pltpu.VMEM((tm, c), jnp.float32)],
        ),
        compiler_params=_cparams(("parallel", "arbitrary")),
        cost_estimate=cost,
    )(a_bf16, x_bf16, w, b)


def gcn_conv2(a_bf16, h1, scale, shift, w, b):
    n = a_bf16.shape[0]
    c = h1.shape[1]
    f = w.shape[1]
    tm = _pick_tile(n, SPMM_TM_TARGET, 16)
    tk = _pick_tile(n, SPMM_TK_TARGET, 128)
    grid = (n // tm, n // tk)
    cost = pl.CostEstimate(
        flops=2 * n * n * c + 2 * n * c * f,
        transcendentals=n * c * grid[0],
        bytes_accessed=2 * n * n + 4 * n * c + 4 * (w.size + b.size + n * f))
    return pl.pallas_call(
        functools.partial(spmm_bn_elu_linear_kernel, tk),
        out_shape=jax.ShapeDtypeStruct((n, f), jnp.float32),
        grid_spec=pltpu.PrefetchScalarGridSpec(
            num_scalar_prefetch=0,
            grid=grid,
            in_specs=[
                pl.BlockSpec((tm, tk), lambda i, k: (i, k)),   # A stream
                pl.BlockSpec((n, c), lambda i, k: (0, 0)),     # h1 VMEM-resident (f32)
                pl.BlockSpec((1, c), lambda i, k: (0, 0)),     # BN scale (folded)
                pl.BlockSpec((1, c), lambda i, k: (0, 0)),     # BN shift (folded)
                pl.BlockSpec((c, f), lambda i, k: (0, 0)),
                pl.BlockSpec((1, f), lambda i, k: (0, 0)),
            ],
            out_specs=pl.BlockSpec((tm, f), lambda i, k: (i, 0)),
            scratch_shapes=[pltpu.VMEM((tm, c), jnp.float32)],
        ),
        compiler_params=_cparams(("parallel", "arbitrary")),
        cost_estimate=cost,
    )(a_bf16, h1, scale, shift, w, b)


def bn_sum(h):
    n, c = h.shape
    tm = _pick_tile(n, 512, 8)
    return pl.pallas_call(
        bn_sum_kernel,
        out_shape=jax.ShapeDtypeStruct((1, c), jnp.float32),
        grid_spec=pltpu.PrefetchScalarGridSpec(
            num_scalar_prefetch=0,
            grid=(n // tm,),
            in_specs=[pl.BlockSpec((tm, c), lambda i: (i, 0))],
            out_specs=pl.BlockSpec((1, c), lambda i: (0, 0)),
        ),
        compiler_params=_cparams(("arbitrary",)),   # output is an accumulator across i
    )(h)


def bn_centered_ss(h, mean):
    n, c = h.shape
    tm = _pick_tile(n, 512, 8)
    return pl.pallas_call(
        bn_centered_ss_kernel,
        out_shape=jax.ShapeDtypeStruct((1, c), jnp.float32),
        grid_spec=pltpu.PrefetchScalarGridSpec(
            num_scalar_prefetch=0,
            grid=(n // tm,),
            in_specs=[pl.BlockSpec((tm, c), lambda i: (i, 0)),
                      pl.BlockSpec((1, c), lambda i: (0, 0))],
            out_specs=pl.BlockSpec((1, c), lambda i: (0, 0)),
        ),
        compiler_params=_cparams(("arbitrary",)),
    )(h, mean)


def degree_head(z, w1, b1, w2, b2):
    m, c = z.shape
    hdim = w1.shape[1]
    w2r = w2.reshape(1, hdim)       # row layout for the VPU reduce
    tm = _pick_tile(m, 512, 8)
    out = pl.pallas_call(
        degree_mlp_kernel,
        out_shape=jax.ShapeDtypeStruct((m, 1), jnp.float32),
        grid_spec=pltpu.PrefetchScalarGridSpec(
            num_scalar_prefetch=0,
            grid=(m // tm,),
            in_specs=[
                pl.BlockSpec((tm, c), lambda i: (i, 0)),
                pl.BlockSpec((c, hdim), lambda i: (0, 0)),
                pl.BlockSpec((1, hdim), lambda i: (0, 0)),
                pl.BlockSpec((1, hdim), lambda i: (0, 0)),
                pl.BlockSpec((1, 1), lambda i: (0, 0)),
            ],
            out_specs=pl.BlockSpec((tm, 1), lambda i: (i, 0)),
        ),
        compiler_params=_cparams(("parallel",)),
    )(z, w1, b1, w2r, b2)
    return out[:, 0]  # .squeeze()


def edge_head(z_row, z_col, w1, b1, w2, b2):
    e, c = z_row.shape
    hdim = w1.shape[1]
    w1r = w1[:c]                    # acts on z[row]
    w1c = w1[c:]                    # acts on z[col]
    w2r = w2.reshape(1, hdim)
    te = _pick_tile(e, 512, 8)
    out = pl.pallas_call(
        edge_mlp_kernel,
        out_shape=jax.ShapeDtypeStruct((e, 1), jnp.float32),
        grid_spec=pltpu.PrefetchScalarGridSpec(
            num_scalar_prefetch=0,
            grid=(e // te,),
            in_specs=[
                pl.BlockSpec((te, c), lambda i: (i, 0)),
                pl.BlockSpec((te, c), lambda i: (i, 0)),
                pl.BlockSpec((c, hdim), lambda i: (0, 0)),
                pl.BlockSpec((c, hdim), lambda i: (0, 0)),
                pl.BlockSpec((1, hdim), lambda i: (0, 0)),
                pl.BlockSpec((1, hdim), lambda i: (0, 0)),
                pl.BlockSpec((1, 1), lambda i: (0, 0)),
            ],
            out_specs=pl.BlockSpec((te, 1), lambda i: (i, 0)),
        ),
        compiler_params=_cparams(("parallel",)),
    )(z_row, z_col, w1r, w1c, b1, w2r, b2)
    return out[:, 0]  # .squeeze()


# ----------------------------- JAX glue -------------------------------------

def gcn_normalized_adjacency(edge_index, num_nodes):
    """Dense GCN-normalized adjacency: D^{-1/2} (A + I) D^{-1/2}.

    A[dst, src] accumulates multi-edges (matches PyG message counting); remaining
    self-loops are added only for nodes without one; degree is the row sum."""
    src = edge_index[0]
    dst = edge_index[1]
    a = jnp.zeros((num_nodes, num_nodes), jnp.float32)
    a = a.at[dst, src].add(1.0)
    diag = jnp.arange(num_nodes)
    d = a[diag, diag]
    a = a.at[diag, diag].set(jnp.where(d > 0, d, 1.0))   # add_remaining_self_loops
    deg = a.sum(axis=1)
    d_inv_sqrt = jnp.where(deg > 0, jax.lax.rsqrt(deg), 0.0)
    return d_inv_sqrt[:, None] * a * d_inv_sqrt[None, :]


def edge_masking(edge_index_np, p, key):
    """EdgeMasking: mask = rand(E) > p -> visible; ~mask -> masked."""
    num_edges = edge_index_np.shape[1]
    mask = np.asarray(jax.random.uniform(key, (num_edges,)) > p)
    masked_edges = edge_index_np[:, ~mask]
    visible_edges = edge_index_np[:, mask]
    return masked_edges, visible_edges


def init_linear(key, fan_in, fan_out):
    kw, kb = jax.random.split(key)
    bound = 1.0 / np.sqrt(fan_in)
    w = jax.random.uniform(kw, (fan_in, fan_out), jnp.float32, -bound, bound)
    b = jax.random.uniform(kb, (1, fan_out), jnp.float32, -bound, bound)
    return w, b


def init_maskgae_params(key, in_channels, hidden_channels, embedding_channels):
    ks = jax.random.split(key, 6)
    p = {}
    # GCN encoder
    p["conv1_w"], p["conv1_b"] = init_linear(ks[0], in_channels, hidden_channels)
    p["conv2_w"], p["conv2_b"] = init_linear(ks[1], hidden_channels, embedding_channels)
    p["bn1_gamma"] = jnp.ones((1, hidden_channels), jnp.float32)
    p["bn1_beta"] = jnp.zeros((1, hidden_channels), jnp.float32)
    # StructureDecoder: Linear(2*emb, hidden) -> ReLU -> Linear(hidden, 1)
    p["sd_w1"], p["sd_b1"] = init_linear(ks[2], 2 * embedding_channels, hidden_channels)
    p["sd_w2"], p["sd_b2"] = init_linear(ks[3], hidden_channels, 1)
    # DegreeDecoder: Linear(emb, hidden) -> ReLU -> Linear(hidden, 1)
    p["dd_w1"], p["dd_b1"] = init_linear(ks[4], embedding_channels, hidden_channels)
    p["dd_w2"], p["dd_b2"] = init_linear(ks[5], hidden_channels, 1)
    return p


def maskgae_forward(params, x, edge_index_np, num_nodes, masking_ratio, mask_key):
    # 1) edge masking (host glue — mirrors EdgeMasking.__call__)
    masked_edges, visible_edges = edge_masking(edge_index_np, masking_ratio, mask_key)

    # 2) GCN encoder on visible edges (dense normalized adjacency, stored bf16).
    a_norm = gcn_normalized_adjacency(jnp.asarray(visible_edges), num_nodes)
    a_bf16 = a_norm.astype(jnp.bfloat16)
    x_bf16 = x.astype(jnp.bfloat16)

    # conv1: h1 = (A @ X) @ W1 + b1 — single SpMM pallas_call.
    h1 = gcn_conv1(a_bf16, x_bf16, params["conv1_w"], params["conv1_b"])

    # BatchNorm1d (training-mode batch stats, eps=1e-5) with a shifted two-pass variance.
    nf = jnp.float32(num_nodes)
    mean = bn_sum(h1) / nf
    var = bn_centered_ss(h1, mean) / nf              # biased variance
    inv_std = jax.lax.rsqrt(var + 1e-5)
    scale = params["bn1_gamma"] * inv_std
    shift = params["bn1_beta"] - mean * scale

    # conv2 fused: z = (A @ ELU(BN(h1))) @ W2 + b2 — BN/ELU applied inside the SpMM.
    z = gcn_conv2(a_bf16, h1, scale, shift, params["conv2_w"], params["conv2_b"])

    # 3) structure decoder on masked edges: sigmoid(MLP([z[row] ; z[col]]))
    if masked_edges.shape[1] == 0:
        edge_pred = jnp.zeros((0,), jnp.float32)
    else:
        row = jnp.asarray(masked_edges[0])
        col = jnp.asarray(masked_edges[1])
        edge_pred = edge_head(jnp.take(z, row, axis=0), jnp.take(z, col, axis=0),
                              params["sd_w1"], params["sd_b1"],
                              params["sd_w2"], params["sd_b2"])

    # 4) degree decoder on all node embeddings
    deg_pred = degree_head(z, params["dd_w1"], params["dd_b1"],
                           params["dd_w2"], params["dd_b2"])

    return z, edge_pred, deg_pred


# ----------------------------- demo ------------------------------------------

if __name__ == "__main__":
    num_nodes = 32
    num_edges = 64
    in_channels = 16
    hidden_channels = 32
    embedding_channels = 8
    masking_ratio = 0.7

    root = jax.random.PRNGKey(0)
    k_x, k_src, k_dst, k_param, k_mask = jax.random.split(root, 5)

    x = jax.random.normal(k_x, (num_nodes, in_channels), jnp.float32)
    src = np.asarray(jax.random.randint(k_src, (num_edges,), 0, num_nodes))
    dst = np.asarray(jax.random.randint(k_dst, (num_edges,), 0, num_nodes))
    edge_index_np = np.stack([src, dst], axis=0)  # (2, E)

    params = init_maskgae_params(k_param, in_channels, hidden_channels, embedding_channels)

    z, edge_pred, deg_pred = maskgae_forward(
        params, x, edge_index_np, num_nodes, masking_ratio, k_mask)

    jax.block_until_ready((z, edge_pred, deg_pred))

    assert z.shape == (num_nodes, embedding_channels)
    assert deg_pred.shape == (num_nodes,)
    assert edge_pred.ndim == 1 and edge_pred.shape[0] <= num_edges
    assert bool(jnp.all(jnp.isfinite(z)))
    assert bool(jnp.all(jnp.isfinite(deg_pred)))
    assert bool(jnp.all((edge_pred >= 0.0) & (edge_pred <= 1.0)))

    print("KERNEL_OK")
</pallas_src>

<mosaic_0001>
module attributes {stable_mosaic.version = 11 : i64} {
  func.func @spmm_linear_kernel(%arg0: i32, %arg1: i32, %arg2: memref<32x32xbf16, #tpu.memory_space<vmem>>, %arg3: memref<32x16xbf16, #tpu.memory_space<vmem>>, %arg4: memref<16x32xf32, #tpu.memory_space<vmem>>, %arg5: memref<1x32xf32, #tpu.memory_space<vmem>>, %arg6: memref<32x32xf32, #tpu.memory_space<vmem>>, %arg7: memref<32x16xf32, #tpu.memory_space<vmem>>) attributes {dimension_semantics = [#tpu.dimension_semantics<parallel>, #tpu.dimension_semantics<arbitrary>], iteration_bounds = array<i64: 1, 1>, scalar_prefetch = 0 : i64, scratch_operands = 1 : i64, tpu.core_type = #tpu.core_type<tc>, window_params = [{transform_indices = @transform_0, window_bounds = array<i64: 32, 32>}, {pipeline_mode = #tpu.pipeline_mode<synchronous>, transform_indices = @transform_1, window_bounds = array<i64: 32, 16>}, {pipeline_mode = #tpu.pipeline_mode<synchronous>, transform_indices = @transform_2, window_bounds = array<i64: 16, 32>}, {pipeline_mode = #tpu.pipeline_mode<synchronous>, transform_indices = @transform_3, window_bounds = array<i64: 1, 32>}, {transform_indices = @transform_4, window_bounds = array<i64: 32, 32>}]} {
    %c0_i32 = arith.constant 0 : i32
    %0 = arith.cmpi eq, %arg1, %c0_i32 : i32
    %1 = arith.extui %0 : i1 to i32
    %c0_i32_0 = arith.constant 0 : i32
    %2 = arith.cmpi ne, %1, %c0_i32_0 : i32
    scf.if %2 {
      %cst_10 = arith.constant 0.000000e+00 : f32
      %12 = vector.broadcast %cst_10 : f32 to vector<32x16xf32>
      %c0_11 = arith.constant 0 : index
      %c0_12 = arith.constant 0 : index
      %13 = vector.load %arg7[%c0_11, %c0_12] : memref<32x16xf32, #tpu.memory_space<vmem>>, vector<32x16xf32>
      tpu.vector_store %arg7[%c0_11, %c0_12], %12 {strides = array<i32>} : memref<32x16xf32, #tpu.memory_space<vmem>>, vector<32x16xf32>,
    } else {
    }
    %c0 = arith.constant 0 : index
    %c0_1 = arith.constant 0 : index
    %3 = vector.load %arg3[%c0, %c0_1] : memref<32x16xbf16, #tpu.memory_space<vmem>>, vector<32x16xbf16>
    %c0_2 = arith.constant 0 : index
    %c0_3 = arith.constant 0 : index
    %4 = vector.load %arg7[%c0_2, %c0_3] : memref<32x16xf32, #tpu.memory_space<vmem>>, vector<32x16xf32>
    %c0_4 = arith.constant 0 : index
    %c0_5 = arith.constant 0 : index
    %5 = vector.load %arg2[%c0_4, %c0_5] : memref<32x32xbf16, #tpu.memory_space<vmem>>, vector<32x32xbf16>
    %cst = arith.constant dense<0.000000e+00> : vector<32x16xf32>
    %6 = tpu.matmul %5, %3, %cst {dimension_numbers = #tpu.dot_dimension_numbers<[1], [0], [0], [1], [0, 0, 1, 1], [], []>} : vector<32x32xbf16>, vector<32x16xbf16>, vector<32x16xf32> -> vector<32x16xf32>
    %7 = arith.addf %4, %6 : vector<32x16xf32>
    %c0_6 = arith.constant 0 : index
    %c0_7 = arith.constant 0 : index
    %8 = vector.load %arg7[%c0_6, %c0_7] : memref<32x16xf32, #tpu.memory_space<vmem>>, vector<32x16xf32>
    tpu.vector_store %arg7[%c0_6, %c0_7], %7 {strides = array<i32>} : memref<32x16xf32, #tpu.memory_space<vmem>>, vector<32x16xf32>,
    %c0_i32_8 = arith.constant 0 : i32
    %9 = arith.cmpi eq, %arg1, %c0_i32_8 : i32
    %10 = arith.extui %9 : i1 to i32
    %c0_i32_9 = arith.constant 0 : i32
    %11 = arith.cmpi ne, %10, %c0_i32_9 : i32
    scf.if %11 {
      %c0_10 = arith.constant 0 : index
      %c0_11 = arith.constant 0 : index
      %12 = vector.load %arg7[%c0_10, %c0_11] : memref<32x16xf32, #tpu.memory_space<vmem>>, vector<32x16xf32>
      %c0_12 = arith.constant 0 : index
      %c0_13 = arith.constant 0 : index
      %13 = vector.load %arg4[%c0_12, %c0_13] : memref<16x32xf32, #tpu.memory_space<vmem>>, vector<16x32xf32>
      %cst_14 = arith.constant dense<0.000000e+00> : vector<32x32xf32>
      %14 = tpu.matmul %12, %13, %cst_14 {dimension_numbers = #tpu.dot_dimension_numbers<[1], [0], [0], [1], [0, 0, 1, 1], [], []>} : vector<32x16xf32>, vector<16x32xf32>, vector<32x32xf32> -> vector<32x32xf32>
      %c0_15 = arith.constant 0 : index
      %c0_16 = arith.constant 0 : index
      %15 = vector.load %arg5[%c0_15, %c0_16] : memref<1x32xf32, #tpu.memory_space<vmem>>, vector<1x32xf32>
      %16 = vector.broadcast %15 : vector<1x32xf32> to vector<32x32xf32>
      %17 = arith.addf %14, %16 : vector<32x32xf32>
      %c0_17 = arith.constant 0 : index
      %c0_18 = arith.constant 0 : index
      %18 = vector.load %arg6[%c0_17, %c0_18] : memref<32x32xf32, #tpu.memory_space<vmem>>, vector<32x32xf32>
      tpu.vector_store %arg6[%c0_17, %c0_18], %17 {strides = array<i32>} : memref<32x32xf32, #tpu.memory_space<vmem>>, vector<32x32xf32>,
    } else {
    }
    return
  }
  func.func @transform_0(%arg0: i32, %arg1: i32) -> (i32, i32) {
    %c0_i32 = arith.constant 0 : i32
    return %arg0, %arg1 : i32, i32
  }
  func.func @transform_1(%arg0: i32, %arg1: i32) -> (i32, i32) {
    %c0_i32 = arith.constant 0 : i32
    %c0_i32_0 = arith.constant 0 : i32
    %c0_i32_1 = arith.constant 0 : i32
    return %c0_i32, %c0_i32_0 : i32, i32
  }
  func.func @transform_2(%arg0: i32, %arg1: i32) -> (i32, i32) {
    %c0_i32 = arith.constant 0 : i32
    %c0_i32_0 = arith.constant 0 : i32
    %c0_i32_1 = arith.constant 0 : i32
    return %c0_i32, %c0_i32_0 : i32, i32
  }
  func.func @transform_3(%arg0: i32, %arg1: i32) -> (i32, i32) {
    %c0_i32 = arith.constant 0 : i32
    %c0_i32_0 = arith.constant 0 : i32
    %c0_i32_1 = arith.constant 0 : i32
    return %c0_i32, %c0_i32_0 : i32, i32
  }
  func.func @transform_4(%arg0: i32, %arg1: i32) -> (i32, i32) {
    %c0_i32 = arith.constant 0 : i32
    %c0_i32_0 = arith.constant 0 : i32
    return %arg0, %c0_i32 : i32, i32
  }
}

</mosaic_0001>

<bundles_post_ra>
// kernel: tpu_custom_call.1
= control target key start
LH: loop header
LB: loop body
LE: loop exit
PB: predicated region body
PF: predicated region fallthrough
CT: control target
= control target key end

     0   :  { %9 = vsyncpa [#allocation4], 0  ;;  %s468_s0 = inlined_call_operand.vmem [shape: bf16[32,32], index: 0, kind: input, shape index: {}]   ;;  %s469_s1 = inlined_call_operand.vmem [shape: bf16[32,16], index: 1, kind: input, shape index: {}]   ;;  %s470_s2 = inlined_call_operand.hbm [shape: f32[16,32], index: 2, kind: input, shape index: {}]   ;;  %s471_s3 = inlined_call_operand.vmem [shape: f32[1,32], index: 3, kind: input, shape index: {}]   ;;  %s472_s4 = inlined_call_operand.hbm [shape: f32[32,32], index: 4, kind: output, shape index: {}]  }
   0x1   :  { %10 = vsyncpa [#allocation5], 0  ;;  %s375_s15 = smov [#allocation3]   ;;  %s327_s19 = scalar_lea.hbm %s470_s2, 256 }
   0x2   :  { %s20_s16 = sshll.u32 %s375_s15, 4  ;;  %p328_p0 = scmp.ne.s32.totalorder %s470_s2, %s327_s19  ;;  %s21_s16 = int_to_ptr.vmem [resolvable:$true] %s20_s16 }
   0x3   :  { %p331_p1 = scmp.lt.u32.totalorder %s327_s19, %s470_s2 }
   0x5   :  { %p333_p2 = pnand %p331_p1, %p328_p0 }
   0x7   :  { %336 = shalt.err (!%p333_p2)
}
   0x8   :  { %s337_s24 = scalar_lea.vmem %s21_s16, 256  ;;  %p342_p4 = scmp.lt.s32.totalorder %s21_s16, %s21_s16 }
   0x9   :  { %p338_p3 = scmp.ne.s32.totalorder %s21_s16, %s337_s24  ;;  %p343_p5 = scmp.lt.s32.totalorder %s337_s24, %s337_s24 }
   0xb   :  { %p344_p6 = por %p343_p5, %p342_p4 }
   0xd   :  { %p345_p7 = pnand %p344_p6, %p338_p3 }
   0xf   :  { %348 = shalt.err (!%p345_p7)
}
  0x10   :  { %s376_s25 = smov 128   ;;  %s377_s26 = smov 8  }
  0x11   :  { %26 = dma.hbm_to_vmem [thread:$0]  %s470_s2, 256, %s21_s16, [#allocation4], %s376_s25, %s376_s25, %s377_s26  }
  0x12   :  { %371 = dma.done.wait [#allocation4], 256  }
  0x13   :  { %372 = vsyncadd [#allocation4], 4294967040  ;;  %vm37_vm0 = vcmask 130048   ;;  %v378_v0 = vmov 0.0   ;;  %v323_v1 = vld [vmem:[%s469_s1] sm:$0xff]   ;;  %v324_v2 = vld [vmem:[%s469_s1 + $0x8] sm:$0xff]  }
  0x14   :  { %40 = vst.msk [vmem:[#allocation2 + $0x10] sm:$0xff] %vm37_vm0, %v378_v0  ;;  %38 = vst.msk [vmem:[#allocation2] sm:$0xff] %vm37_vm0, %v378_v0  ;;  %vm76_vm1 = vcmask 261120   ;;  %296 = vmatprep.subr.bf16.mxu0 %v323_v1  ;;  %v325_v3 = vld [vmem:[%s468_s0] sm:$0xff]   ;;  %v326_v4 = vld [vmem:[%s468_s0 + $0x8] sm:$0xff]   ;;  %s379_s10 = smov [#allocation6]  }
  0x15   :  { %39 = vst.msk [vmem:[#allocation2 + $0x8] sm:$0xff] %vm37_vm0, %v378_v0  ;;  %41 = vst.msk [vmem:[#allocation2 + $0x18] sm:$0xff] %vm37_vm0, %v378_v0  ;;  %297 = vmatpush3.bf16.msra.mxu0 %v323_v1  ;;  %300 = vmatprep.mubr.msk.bf16.mxu0 %vm76_vm1, %v325_v3  ;;  %v148_v5 = vld [vmem:[#allocation3] sm:$0xff]  ;;  %v149_v6 = vld [vmem:[#allocation3 + $0x8] sm:$0xff]  ;;  %s263_s11 = sshll.u32 %s379_s10, 4  ;;  %s264_s11 = int_to_ptr.vmem [resolvable:$true] %s263_s11 }
  0x16   :  { %298 = vmatprep.subr.bf16.mxu0 %v324_v2  ;;  %v314_v7 = vpack.c.bf16 %v149_v6, %v148_v5  ;;  %v281_v24 = vld [vmem:[%s471_s3] ss:$0 sm:$0xff]  ;;  %s349_s3 = scalar_lea.vmem %s264_s11, 512  ;;  %p354_p9 = scmp.lt.s32.totalorder %s264_s11, %s264_s11 }
  0x17   :  { %p350_p8 = scmp.ne.s32.totalorder %s264_s11, %s349_s3  ;;  %p355_p10 = scmp.lt.s32.totalorder %s349_s3, %s349_s3 }
  0x18   :  { %315 = vmatprep.subr.bf16.mxu1 %v314_v7 }
  0x19   :  { %299 = vmatpush3.bf16.msra.mxu0 %v324_v2  ;;  %317 = vmatpush3.bf16.msra.mxu1 %v314_v7  ;;  %p356_p11 = por %p355_p10, %p354_p9 }
  0x1b   :  { %v48_v8 = vld [vmem:[#allocation2 + $0x10] sm:$0xff]  ;;  %v46_v9 = vld [vmem:[#allocation2] sm:$0xff]  ;;  %p357_p12 = pnand %p356_p11, %p350_p8 }
  0x1c   :  { %301 = vmatmul.mubr.msk.bf16.vlgmr.msra.gmra.mrb[0].mxu0 %vm76_vm1, %v326_v4  ;;  %v49_v11 = vld [vmem:[#allocation2 + $0x18] sm:$0xff]  ;;  %v47_v14 = vld [vmem:[#allocation2 + $0x8] sm:$0xff] }
  0xef   :  { %v302_v10 = vpop.f32.mrb[0].mxu0 }
  0xf0   :  { %v134_v12 = vadd.f32 %v302_v10, %v48_v8  ;;  %v117_v13 = vpop.f32.mrb[1].mxu0 }
  0xf1   :  { %v132_v15 = vadd.f32 %v117_v13, %v46_v9  ;;  %v303_v16 = vpop.f32.mrb[2].mxu0 }
  0xf2   :  { %139 = vst.msk [vmem:[#allocation2 + $0x10] sm:$0xff] %vm37_vm0, %v134_v12  ;;  %v135_v17 = vadd.f32 %v303_v16, %v49_v11  ;;  %v120_v18 = vpop.f32.mrb[3].mxu0 }
  0xf3   :  { %137 = vst.msk [vmem:[#allocation2] sm:$0xff] %vm37_vm0, %v132_v15  ;;  %v133_v19 = vadd.f32 %v120_v18, %v47_v14 }
  0xf4   :  { %140 = vst.msk [vmem:[#allocation2 + $0x18] sm:$0xff] %vm37_vm0, %v135_v17 }
  0xf5   :  { %138 = vst.msk [vmem:[#allocation2 + $0x8] sm:$0xff] %vm37_vm0, %v133_v19 }
  0xf9   :  { %v146_v22 = vld [vmem:[#allocation2 + $0x10] sm:$0xff] }
  0xfa   :  { %v144_v20 = vld [vmem:[#allocation2] sm:$0xff] }
  0xfb   :  { %308 = vmatprep.mubr.msk.f32.mxu1 %vm37_vm0, %v144_v20  ;;  %v147_v23 = vld [vmem:[#allocation2 + $0x18] sm:$0xff] }
  0xfc   :  { %v145_v21 = vld [vmem:[#allocation2 + $0x8] sm:$0xff] }
  0xfd   :  { %309 = vmatmul.mubr.msk.f32.vlgmr.msra.gmra.mrb[0].mxu1 %vm37_vm0, %v145_v21 }
  0xfe   :  { %311 = vmatprep.mubr.msk.f32.mxu1 %vm37_vm0, %v146_v22 }
 0x101   :  { %312 = vmatmul.mubr.msk.f32.gmra.mrb[2].mxu1 %vm37_vm0, %v147_v23 }
 0x1d0   :  { %v310_v25 = vpop.f32.mrb[0].mxu1 }
 0x1d1   :  { %v241_v26 = vadd.f32 %v310_v25, %v281_v24  ;;  %v235_v27 = vpop.f32.mrb[1].mxu1 }
 0x1d2   :  { %v236_v28 = vadd.f32 %v281_v24, %v235_v27 }
 0x1d3   :  { %255 = vst.msk [vmem:[#allocation6 + $0x8] sm:$0xff] %vm76_vm1, %v241_v26 }
 0x1d4   :  { %254 = vst.msk [vmem:[#allocation6] sm:$0xff] %vm76_vm1, %v236_v28  ;;  %v313_v29 = vpop.f32.mrb[2].mxu1 }
 0x1d5   :  { %v251_v30 = vadd.f32 %v313_v29, %v281_v24  ;;  %v245_v31 = vpop.f32.mrb[3].mxu1 }
 0x1d6   :  { %v246_v32 = vadd.f32 %v281_v24, %v245_v31 }
 0x1d7   :  { %257 = vst.msk [vmem:[#allocation6 + $0x18] sm:$0xff] %vm76_vm1, %v251_v30 }
 0x1d8   :  { %256 = vst.msk [vmem:[#allocation6 + $0x10] sm:$0xff] %vm76_vm1, %v246_v32 }
 0x1d9   :  { %360 = shalt.err (!%p357_p12)
}
 0x1da   :  { %s361_s14 = scalar_lea.hbm %s472_s4, 512 }
 0x1db   :  { %p362_p13 = scmp.ne.s32.totalorder %s472_s4, %s361_s14  ;;  %p365_p0 = scmp.lt.u32.totalorder %s361_s14, %s472_s4 }
 0x1dd   :  { %p367_p1 = pnand %p365_p0, %p362_p13 }
 0x1df   :  { %370 = shalt.err (!%p367_p1)
}
 0x1e0   :  { %269 = dma.vmem_to_hbm [thread:$0]  %s264_s11, 512, %s472_s4, [#allocation5], %s376_s25, %s376_s25, %s377_s26  }
 0x1e1   :  { %373 = dma.done.wait [#allocation5], 512  }
 0x1e2   :  { %374 = vsyncadd [#allocation5], 4294966784 }
 0x1e3   :  { %273 = vsyncpa [#allocation4], 1 }
 0x1e4   :  { %274 = vsyncpa [#allocation5], 1 }

</bundles_post_ra>
